<compile_context>
chip_gen: v5e
topology: v5e:2x2
jax: 0.10.0
libtpu: 0.0.40
codegen_flags: <defaults>
</compile_context>

<pallas_src>
import functools

import jax
import jax.numpy as jnp
from jax.experimental import pallas as pl
from jax.experimental.pallas import tpu as pltpu


LANE = 128      # lane width: last-dim alignment target
SUBLANE = 8     # sublane width: second-to-last-dim alignment target
MAX_TB = 512    # max batch rows per grid step (per-tile working set stays tiny)


def _round_up(x, m):
    return ((x + m - 1) // m) * m


def _pad2(a, rows, cols):
    return jnp.pad(a, ((0, rows - a.shape[0]), (0, cols - a.shape[1])))


def embedding_kernel(x_ref, p_ref, w1s_ref, w1c_ref, b1_ref, w2_ref, b2_ref, o_ref):
    # angle + sinusoidal features: VPU (mul) + EUP (sin/cos), overlaps with MXU.
    angle = x_ref[...] * p_ref[...]                               # (TB, pd_pad)

    # dense1 without concat: split-W1 trick.  Padded angle lanes have
    # angle == 0 -> sin contributes 0; cos contributes 1 * (zero-padded W1c
    # rows) == 0, so padding is exact.
    h = (
        jnp.dot(jnp.sin(angle), w1s_ref[...], preferred_element_type=jnp.float32)
        + jnp.dot(jnp.cos(angle), w1c_ref[...], preferred_element_type=jnp.float32)
        + b1_ref[...]
    )                                                             # (TB, h_pad)

    # leaky_relu(h, 0.01)
    h = jnp.where(h > 0, h, 0.01 * h)

    # dense2 — lane-dense output store (o_pad is a multiple of 128).
    o_ref[...] = (
        jnp.dot(h, w2_ref[...], preferred_element_type=jnp.float32) + b2_ref[...]
    ).astype(o_ref.dtype)


@functools.partial(jax.jit, static_argnames=("projection_dim", "num_embed"))
def torch_embedding_forward(inputs, projection, w1, b1, w2, b2,
                            *, projection_dim, num_embed):
    """inputs/projection: (B, pd).  w1: (2*ne, 2*pd), b1: (2*ne,) torch layout.
    w2: (ne, 2*ne), b2: (ne,) torch layout.  Returns (B, ne)."""
    batch = inputs.shape[0]
    pd = projection_dim
    ne = num_embed

    # ---- lane/sublane padded geometry (done once, wrapper-side) -------------
    pd_pad = _round_up(pd, LANE)            # contraction dim of dense1 halves
    h_pad = _round_up(2 * ne, LANE)         # hidden width (dense1 out)
    o_pad = _round_up(ne, LANE)             # output width (dense2 out)

    tb = min(MAX_TB, _round_up(batch, SUBLANE))
    b_pad = _round_up(batch, tb)
    grid = (b_pad // tb,)

    # ---- pad activations ----------------------------------------------------
    x_p = _pad2(inputs.astype(jnp.float32), b_pad, pd_pad)
    p_p = _pad2(projection.astype(jnp.float32), b_pad, pd_pad)

    # ---- split + transpose + pad weights (W laid out [in, out]) -------------
    w1_t = w1.T.astype(jnp.float32)                  # (2*pd, 2*ne)
    w1s_p = _pad2(w1_t[:pd, :], pd_pad, h_pad)       # sin half, zero-padded rows
    w1c_p = _pad2(w1_t[pd:, :], pd_pad, h_pad)       # cos half, zero-padded rows
    b1_p = _pad2(b1.astype(jnp.float32).reshape(1, -1), 1, h_pad)

    w2_p = _pad2(w2.T.astype(jnp.float32), h_pad, o_pad)
    b2_p = _pad2(b2.astype(jnp.float32).reshape(1, -1), 1, o_pad)

    # ---- cost hint for the XLA scheduler ------------------------------------
    flops = 2 * batch * (2 * pd * 2 * ne + 2 * ne * ne)
    transcendentals = 2 * batch * pd
    bytes_accessed = 4 * (
        x_p.size + p_p.size + w1s_p.size + w1c_p.size + b1_p.size
        + w2_p.size + b2_p.size + b_pad * o_pad
    )

    out_padded = pl.pallas_call(
        embedding_kernel,
        out_shape=jax.ShapeDtypeStruct((b_pad, o_pad), jnp.float32),
        grid=grid,
        in_specs=[
            pl.BlockSpec((tb, pd_pad), lambda i: (i, 0)),      # inputs tile
            pl.BlockSpec((tb, pd_pad), lambda i: (i, 0)),      # projection tile
            pl.BlockSpec((pd_pad, h_pad), lambda i: (0, 0)),   # W1 sin half (resident)
            pl.BlockSpec((pd_pad, h_pad), lambda i: (0, 0)),   # W1 cos half (resident)
            pl.BlockSpec((1, h_pad), lambda i: (0, 0)),        # b1 (resident)
            pl.BlockSpec((h_pad, o_pad), lambda i: (0, 0)),    # W2 (resident)
            pl.BlockSpec((1, o_pad), lambda i: (0, 0)),        # b2 (resident)
        ],
        out_specs=pl.BlockSpec((tb, o_pad), lambda i: (i, 0)),
        compiler_params=pltpu.CompilerParams(
            dimension_semantics=("parallel",),        # shard batch tiles across v7x's 2 TCs
            vmem_limit_bytes=32 * 1024 * 1024,        # safe on v7x (64 MiB physical)
        ),
        cost_estimate=pl.CostEstimate(
            flops=flops,
            transcendentals=transcendentals,
            bytes_accessed=bytes_accessed,
        ),
    )(x_p, p_p, w1s_p, w1c_p, b1_p, w2_p, b2_p)

    return out_padded[:batch, :ne]


def init_linear_params(key, in_features, out_features):
    # torch.nn.Linear default init: U[-1/sqrt(in), 1/sqrt(in)], torch layout.
    k_w, k_b = jax.random.split(key)
    bound = 1.0 / (in_features ** 0.5)
    w = jax.random.uniform(
        k_w, (out_features, in_features), jnp.float32, -bound, bound
    )
    b = jax.random.uniform(k_b, (out_features,), jnp.float32, -bound, bound)
    return w, b


def reference_forward(inputs, projection, w1, b1, w2, b2):
    angle = inputs * projection
    emb = jnp.concatenate([jnp.sin(angle), jnp.cos(angle)], axis=-1)
    h = emb @ w1.T + b1
    h = jnp.where(h > 0, h, 0.01 * h)
    return h @ w2.T + b2


if __name__ == "__main__":
    projection_dim = 5
    num_embed = 10

    key = jax.random.PRNGKey(0)
    k_d1, k_d2, k_data = jax.random.split(key, 3)

    # dense1: Linear(2*pd, 2*ne); dense2: Linear(2*ne, ne)
    w1, b1 = init_linear_params(k_d1, 2 * projection_dim, 2 * num_embed)
    w2, b2 = init_linear_params(k_d2, 2 * num_embed, num_embed)

    ok = True
    # Case 1: the spec's shapes (batch=1). Case 2: multi-tile batch to
    # exercise the grid + ragged batch padding path.
    for batch in (1, 1200):
        k_in, k_proj, k_data = jax.random.split(k_data, 3)
        inputs = jax.random.uniform(k_in, (batch, projection_dim), jnp.float32)
        projection = jax.random.uniform(k_proj, (batch, projection_dim), jnp.float32)

        out = torch_embedding_forward(
            inputs, projection, w1, b1, w2, b2,
            projection_dim=projection_dim, num_embed=num_embed,
        )
        out = jax.block_until_ready(out)

        ref = reference_forward(inputs, projection, w1, b1, w2, b2)
        ok = ok and out.shape == (batch, num_embed)
        ok = ok and bool(jnp.allclose(out, ref, atol=1e-5, rtol=1e-5))

    assert ok
    print("KERNEL_OK")
</pallas_src>

<mosaic_0001>
module attributes {stable_mosaic.version = 11 : i64} {
  func.func @embedding_kernel(%arg0: i32, %arg1: memref<8x128xf32, #tpu.memory_space<vmem>>, %arg2: memref<8x128xf32, #tpu.memory_space<vmem>>, %arg3: memref<128x128xf32, #tpu.memory_space<vmem>>, %arg4: memref<128x128xf32, #tpu.memory_space<vmem>>, %arg5: memref<1x128xf32, #tpu.memory_space<vmem>>, %arg6: memref<128x128xf32, #tpu.memory_space<vmem>>, %arg7: memref<1x128xf32, #tpu.memory_space<vmem>>, %arg8: memref<8x128xf32, #tpu.memory_space<vmem>>) attributes {dimension_semantics = [#tpu.dimension_semantics<parallel>], iteration_bounds = array<i64: 1>, scalar_prefetch = 0 : i64, scratch_operands = 0 : i64, tpu.core_type = #tpu.core_type<tc>, window_params = [{transform_indices = @transform_0, window_bounds = array<i64: 8, 128>}, {transform_indices = @transform_1, window_bounds = array<i64: 8, 128>}, {pipeline_mode = #tpu.pipeline_mode<synchronous>, transform_indices = @transform_2, window_bounds = array<i64: 128, 128>}, {pipeline_mode = #tpu.pipeline_mode<synchronous>, transform_indices = @transform_3, window_bounds = array<i64: 128, 128>}, {pipeline_mode = #tpu.pipeline_mode<synchronous>, transform_indices = @transform_4, window_bounds = array<i64: 1, 128>}, {pipeline_mode = #tpu.pipeline_mode<synchronous>, transform_indices = @transform_5, window_bounds = array<i64: 128, 128>}, {pipeline_mode = #tpu.pipeline_mode<synchronous>, transform_indices = @transform_6, window_bounds = array<i64: 1, 128>}, {transform_indices = @transform_7, window_bounds = array<i64: 8, 128>}]} {
    %c0 = arith.constant 0 : index
    %c0_0 = arith.constant 0 : index
    %0 = vector.load %arg1[%c0, %c0_0] : memref<8x128xf32, #tpu.memory_space<vmem>>, vector<8x128xf32>
    %c0_1 = arith.constant 0 : index
    %c0_2 = arith.constant 0 : index
    %1 = vector.load %arg2[%c0_1, %c0_2] : memref<8x128xf32, #tpu.memory_space<vmem>>, vector<8x128xf32>
    %2 = arith.mulf %0, %1 : vector<8x128xf32>
    %3 = math.sin %2 : vector<8x128xf32>
    %c0_3 = arith.constant 0 : index
    %c0_4 = arith.constant 0 : index
    %4 = vector.load %arg3[%c0_3, %c0_4] : memref<128x128xf32, #tpu.memory_space<vmem>>, vector<128x128xf32>
    %cst = arith.constant dense<0.000000e+00> : vector<8x128xf32>
    %5 = tpu.matmul %3, %4, %cst {dimension_numbers = #tpu.dot_dimension_numbers<[1], [0], [0], [1], [0, 0, 1, 1], [], []>} : vector<8x128xf32>, vector<128x128xf32>, vector<8x128xf32> -> vector<8x128xf32>
    %6 = math.cos %2 : vector<8x128xf32>
    %c0_5 = arith.constant 0 : index
    %c0_6 = arith.constant 0 : index
    %7 = vector.load %arg4[%c0_5, %c0_6] : memref<128x128xf32, #tpu.memory_space<vmem>>, vector<128x128xf32>
    %cst_7 = arith.constant dense<0.000000e+00> : vector<8x128xf32>
    %8 = tpu.matmul %6, %7, %cst_7 {dimension_numbers = #tpu.dot_dimension_numbers<[1], [0], [0], [1], [0, 0, 1, 1], [], []>} : vector<8x128xf32>, vector<128x128xf32>, vector<8x128xf32> -> vector<8x128xf32>
    %9 = arith.addf %5, %8 : vector<8x128xf32>
    %c0_8 = arith.constant 0 : index
    %c0_9 = arith.constant 0 : index
    %10 = vector.load %arg5[%c0_8, %c0_9] : memref<1x128xf32, #tpu.memory_space<vmem>>, vector<1x128xf32>
    %11 = vector.broadcast %10 : vector<1x128xf32> to vector<8x128xf32>
    %12 = arith.addf %9, %11 : vector<8x128xf32>
    %cst_10 = arith.constant 0.000000e+00 : f32
    %13 = vector.broadcast %cst_10 : f32 to vector<8x128xf32>
    %14 = arith.cmpf ogt, %12, %13 : vector<8x128xf32>
    %cst_11 = arith.constant 0.00999999977 : f32
    %15 = vector.broadcast %cst_11 : f32 to vector<8x128xf32>
    %16 = arith.mulf %15, %12 : vector<8x128xf32>
    %17 = arith.select %14, %12, %16 : vector<8x128xi1>, vector<8x128xf32>
    %c0_12 = arith.constant 0 : index
    %c0_13 = arith.constant 0 : index
    %18 = vector.load %arg6[%c0_12, %c0_13] : memref<128x128xf32, #tpu.memory_space<vmem>>, vector<128x128xf32>
    %cst_14 = arith.constant dense<0.000000e+00> : vector<8x128xf32>
    %19 = tpu.matmul %17, %18, %cst_14 {dimension_numbers = #tpu.dot_dimension_numbers<[1], [0], [0], [1], [0, 0, 1, 1], [], []>} : vector<8x128xf32>, vector<128x128xf32>, vector<8x128xf32> -> vector<8x128xf32>
    %c0_15 = arith.constant 0 : index
    %c0_16 = arith.constant 0 : index
    %20 = vector.load %arg7[%c0_15, %c0_16] : memref<1x128xf32, #tpu.memory_space<vmem>>, vector<1x128xf32>
    %21 = vector.broadcast %20 : vector<1x128xf32> to vector<8x128xf32>
    %22 = arith.addf %19, %21 : vector<8x128xf32>
    %c0_17 = arith.constant 0 : index
    %c0_18 = arith.constant 0 : index
    %23 = vector.load %arg8[%c0_17, %c0_18] : memref<8x128xf32, #tpu.memory_space<vmem>>, vector<8x128xf32>
    tpu.vector_store %arg8[%c0_17, %c0_18], %22 {strides = array<i32>} : memref<8x128xf32, #tpu.memory_space<vmem>>, vector<8x128xf32>,
    return
  }
  func.func @transform_0(%arg0: i32) -> (i32, i32) {
    %c0_i32 = arith.constant 0 : i32
    %c0_i32_0 = arith.constant 0 : i32
    return %arg0, %c0_i32 : i32, i32
  }
  func.func @transform_1(%arg0: i32) -> (i32, i32) {
    %c0_i32 = arith.constant 0 : i32
    %c0_i32_0 = arith.constant 0 : i32
    return %arg0, %c0_i32 : i32, i32
  }
  func.func @transform_2(%arg0: i32) -> (i32, i32) {
    %c0_i32 = arith.constant 0 : i32
    %c0_i32_0 = arith.constant 0 : i32
    %c0_i32_1 = arith.constant 0 : i32
    return %c0_i32, %c0_i32_0 : i32, i32
  }
  func.func @transform_3(%arg0: i32) -> (i32, i32) {
    %c0_i32 = arith.constant 0 : i32
    %c0_i32_0 = arith.constant 0 : i32
    %c0_i32_1 = arith.constant 0 : i32
    return %c0_i32, %c0_i32_0 : i32, i32
  }
  func.func @transform_4(%arg0: i32) -> (i32, i32) {
    %c0_i32 = arith.constant 0 : i32
    %c0_i32_0 = arith.constant 0 : i32
    %c0_i32_1 = arith.constant 0 : i32
    return %c0_i32, %c0_i32_0 : i32, i32
  }
  func.func @transform_5(%arg0: i32) -> (i32, i32) {
    %c0_i32 = arith.constant 0 : i32
    %c0_i32_0 = arith.constant 0 : i32
    %c0_i32_1 = arith.constant 0 : i32
    return %c0_i32, %c0_i32_0 : i32, i32
  }
  func.func @transform_6(%arg0: i32) -> (i32, i32) {
    %c0_i32 = arith.constant 0 : i32
    %c0_i32_0 = arith.constant 0 : i32
    %c0_i32_1 = arith.constant 0 : i32
    return %c0_i32, %c0_i32_0 : i32, i32
  }
  func.func @transform_7(%arg0: i32) -> (i32, i32) {
    %c0_i32 = arith.constant 0 : i32
    %c0_i32_0 = arith.constant 0 : i32
    return %arg0, %c0_i32 : i32, i32
  }
}

</mosaic_0001>

<bundles_post_ra>
// kernel: torch_embedding_forward.1
= control target key start
LH: loop header
LB: loop body
LE: loop exit
PB: predicated region body
PF: predicated region fallthrough
CT: control target
= control target key end

     0   :  { %v478_v44 = vmov 683565275   ;;  %v479_v46 = vmov 2475754826   ;;  %v480_v48 = vmov 2131351028   ;;  %s730_s3 = inlined_call_operand.vmem [shape: f32[128,128], index: 3, kind: input, shape index: {}]   ;;  %s731_s2 = inlined_call_operand.vmem [shape: f32[128,128], index: 2, kind: input, shape index: {}]   ;;  %s732_s0 = inlined_call_operand.vmem [shape: f32[8,128], index: 0, kind: input, shape index: {}]   ;;  %s733_s1 = inlined_call_operand.vmem [shape: f32[8,128], index: 1, kind: input, shape index: {}]   ;;  %s734_s5 = inlined_call_operand.vmem [shape: f32[128,128], index: 5, kind: input, shape index: {}]   ;;  %s735_s4 = inlined_call_operand.vmem [shape: f32[1,128], index: 4, kind: input, shape index: {}]   ;;  %s736_s6 = inlined_call_operand.vmem [shape: f32[1,128], index: 6, kind: input, shape index: {}]   ;;  %s737_s7 = inlined_call_operand.vmem [shape: f32[8,128], index: 7, kind: output, shape index: {}]  }
   0x1   :  { %v369_v0 = vld [vmem:[%s730_s3 + $0x78] sm:$0xff]  ;;  %v368_v2 = vld [vmem:[%s730_s3 + $0x70] sm:$0xff]  ;;  %v367_v4 = vld [vmem:[%s730_s3 + $0x68] sm:$0xff]  ;;  %v481_v50 = vmov 2102212464  }
   0x2   :  { %v199_v1 = vld [vmem:[%s731_s2 + $0x78] sm:$0xff]  ;;  %370 = vmatpush.msra.mxu0 %v369_v0  ;;  %v198_v3 = vld [vmem:[%s731_s2 + $0x70] sm:$0xff]  ;;  %v197_v5 = vld [vmem:[%s731_s2 + $0x68] sm:$0xff]  ;;  %v482_v52 = vmov 920167782  }
   0x3   :  { %390 = vmatpush.msra.mxu1 %v199_v1  ;;  %v366_v6 = vld [vmem:[%s730_s3 + $0x60] sm:$0xff]  ;;  %v365_v8 = vld [vmem:[%s730_s3 + $0x58] sm:$0xff]  ;;  %v364_v10 = vld [vmem:[%s730_s3 + $0x50] sm:$0xff]  ;;  %v483_v60 = vmov 1326507024  }
   0x4   :  { %371 = vmatpush.msra.mxu0 %v368_v2  ;;  %v196_v7 = vld [vmem:[%s731_s2 + $0x60] sm:$0xff]  ;;  %v195_v9 = vld [vmem:[%s731_s2 + $0x58] sm:$0xff]  ;;  %v194_v11 = vld [vmem:[%s731_s2 + $0x50] sm:$0xff] }
   0x5   :  { %391 = vmatpush.msra.mxu1 %v198_v3  ;;  %v363_v12 = vld [vmem:[%s730_s3 + $0x48] sm:$0xff]  ;;  %v26_v14 = vld [vmem:[%s732_s0] sm:$0xff]  ;;  %v361_v19 = vld [vmem:[%s730_s3 + $0x38] sm:$0xff] }
   0x6   :  { %372 = vmatpush.msra.mxu0 %v367_v4  ;;  %v193_v13 = vld [vmem:[%s731_s2 + $0x48] sm:$0xff]  ;;  %v27_v15 = vld [vmem:[%s733_s1] sm:$0xff]  ;;  %v191_v20 = vld [vmem:[%s731_s2 + $0x38] sm:$0xff] }
   0x7   :  { %392 = vmatpush.msra.mxu1 %v197_v5  ;;  %v362_v16 = vld [vmem:[%s730_s3 + $0x40] sm:$0xff]  ;;  %v579_v18 = vmul.f32 %v27_v15, %v26_v14  ;;  %v360_v22 = vld [vmem:[%s730_s3 + $0x30] sm:$0xff]  ;;  %v359_v26 = vld [vmem:[%s730_s3 + $0x28] sm:$0xff] }
   0x8   :  { %373 = vmatpush.msra.mxu0 %v366_v6  ;;  %v192_v17 = vld [vmem:[%s731_s2 + $0x40] sm:$0xff]  ;;  %v190_v23 = vld [vmem:[%s731_s2 + $0x30] sm:$0xff]  ;;  %v189_v27 = vld [vmem:[%s731_s2 + $0x28] sm:$0xff] }
   0x9   :  { %393 = vmatpush.msra.mxu1 %v196_v7  ;;  %v32_v21 = vand.u32 2139095040, %v579_v18  ;;  %v29_v25 = vand.u32 2147483647, %v579_v18  ;;  %v358_v29 = vld [vmem:[%s730_s3 + $0x20] sm:$0xff]  ;;  %v357_v33 = vld [vmem:[%s730_s3 + $0x18] sm:$0xff]  ;;  %v356_v36 = vld [vmem:[%s730_s3 + $0x10] sm:$0xff] }
   0xa   :  { %374 = vmatpush.msra.mxu0 %v365_v8  ;;  %v188_v30 = vld [vmem:[%s731_s2 + $0x20] sm:$0xff]  ;;  %v187_v34 = vld [vmem:[%s731_s2 + $0x18] sm:$0xff]  ;;  %v186_v37 = vld [vmem:[%s731_s2 + $0x10] sm:$0xff]  ;;  %vm31_vm12 = vcmp.lt.s32.totalorder %v579_v18, 0 }
   0xb   :  { %394 = vmatpush.msra.mxu1 %v195_v9  ;;  %v33_v24 = vshrl.u32 %v32_v21, 23  ;;  %v36_v32 = vand.u32 8388607, %v29_v25  ;;  %v355_v41 = vld [vmem:[%s730_s3 + $0x8] sm:$0xff]  ;;  %v354_v54 = vld [vmem:[%s730_s3] sm:$0xff] }
   0xc   :  { %375 = vmatpush.msra.mxu0 %v364_v10  ;;  %v185_v42 = vld [vmem:[%s731_s2 + $0x8] sm:$0xff]  ;;  %v184_v55 = vld [vmem:[%s731_s2] sm:$0xff]  ;;  %vm30_vm13 = vcmp.le.f32.partialorder %v29_v25, 0.7853982 }
   0xd   :  { %395 = vmatpush.msra.mxu1 %v194_v11  ;;  %v463_v28 = vadd.s32 4294967169, %v33_v24  ;;  %v37_v39 = vor.u32 8388608, %v36_v32  ;;  %v426_v25 = vld [vmem:[%s734_s5 + $0x40] sm:$0xff] }
   0xe   :  { %376 = vmatpush.msra.mxu0 %v363_v12 }
   0xf   :  { %396 = vmatpush.msra.mxu1 %v193_v13  ;;  %v39_v31 = vadd.s32 1, %v463_v28  ;;  %v636_v62 = vshll.u32 %v37_v39, 8 }
  0x10   :  { %377 = vmatpush.msra.mxu0 %v362_v16 }
  0x11   :  { %397 = vmatpush.msra.mxu1 %v192_v17  ;;  %vm40_vm0 = vcmp.gt.s32.totalorder %v39_v31, 0  ;;  %v78_v10 = vand.u32 65535, %v636_v62  ;;  %v79_v11 = vshrl.u32 %v636_v62, 16 }
  0x12   :  { %378 = vmatpush.msra.mxu0 %v361_v19  ;;  %v41_v35 = vsel %vm40_vm0, %v39_v31, 0 }
  0x13   :  { %398 = vmatpush.msra.mxu1 %v191_v20  ;;  %v43_v38 = vand.u32 31, %v41_v35  ;;  %v621_v40 = vshrl.u32 %v41_v35, 5 }
  0x14   :  { %379 = vmatpush.msra.mxu0 %v360_v22 }
  0x15   :  { %399 = vmatpush.msra.mxu1 %v190_v23  ;;  %v44_v43 = vsub.s32 32, %v43_v38  ;;  %v46_v45 = vshll.u32 %v478_v44, %v43_v38  ;;  %v49_v47 = vshll.u32 %v479_v46, %v43_v38  ;;  %v52_v49 = vshll.u32 %v480_v48, %v43_v38 }
  0x16   :  { %380 = vmatpush.msra.mxu0 %v359_v26  ;;  %v55_v51 = vshll.u32 %v481_v50, %v43_v38  ;;  %v58_v53 = vshll.u32 %v482_v52, %v43_v38  ;;  %vm61_vm1 = vcmp.lt.s32.totalorder %v621_v40, 1  ;;  %vm64_vm2 = vcmp.lt.s32.totalorder %v621_v40, 4 }
  0x17   :  { %400 = vmatpush.msra.mxu1 %v189_v27  ;;  %v47_v56 = vshrl.u32 %v479_v46, %v44_v43  ;;  %v50_v57 = vshrl.u32 %v480_v48, %v44_v43  ;;  %v53_v58 = vshrl.u32 %v481_v50, %v44_v43  ;;  %v56_v59 = vshrl.u32 %v482_v52, %v44_v43 }
  0x18   :  { %381 = vmatpush.msra.mxu0 %v358_v29  ;;  %v59_v61 = vshrl.u32 %v483_v60, %v44_v43  ;;  %vm63_vm3 = vcmp.lt.s32.totalorder %v621_v40, 3  ;;  %vm62_vm4 = vcmp.lt.s32.totalorder %v621_v40, 2  ;;  %v45_v19 = vshrl.u32 %v478_v44, %v44_v43 }
  0x19   :  { %401 = vmatpush.msra.mxu1 %v188_v30  ;;  %v48_v63 = vor.u32 %v47_v56, %v46_v45  ;;  %v51_v0 = vor.u32 %v50_v57, %v49_v47  ;;  %v54_v1 = vor.u32 %v53_v58, %v52_v49  ;;  %v57_v2 = vor.u32 %v56_v59, %v55_v51 }
  0x1a   :  { %382 = vmatpush.msra.mxu0 %v357_v33  ;;  %v60_v3 = vor.u32 %v59_v61, %v58_v53 }
  0x1b   :  { %402 = vmatpush.msra.mxu1 %v187_v34  ;;  %v69_v4 = vsel %vm61_vm1, %v48_v63, %v51_v0  ;;  %v73_v5 = vsel %vm61_vm1, %v51_v0, %v54_v1  ;;  %v70_v6 = vsel %vm64_vm2, %v57_v2, 920167782  ;;  %v65_v33 = vsel %vm61_vm1, %v45_v19, %v48_v63  ;;  %v431_v19 = vld [vmem:[%s734_s5 + $0x68] sm:$0xff] }
  0x1c   :  { %383 = vmatpush.msra.mxu0 %v356_v36  ;;  %v74_v7 = vsel %vm64_vm2, %v60_v3, 1326507024  ;;  %v71_v8 = vsel %vm63_vm3, %v54_v1, %v70_v6  ;;  %v66_v35 = vsel %vm64_vm2, %v54_v1, 2102212464  ;;  %v484_v36 = vmov 0  }
  0x1d   :  { %403 = vmatpush.msra.mxu1 %v186_v37  ;;  %v75_v9 = vsel %vm63_vm3, %v57_v2, %v74_v7  ;;  %v72_v12 = vsel %vm62_vm4, %v69_v4, %v71_v8  ;;  %v67_v46 = vsel %vm63_vm3, %v51_v0, %v66_v35 }
  0x1e   :  { %384 = vmatpush.msra.mxu0 %v355_v41  ;;  %v76_v13 = vsel %vm62_vm4, %v73_v5, %v75_v9  ;;  %v102_v16 = vand.u32 65535, %v72_v12  ;;  %v103_v17 = vshrl.u32 %v72_v12, 16 }
  0x1f   :  { %404 = vmatpush.msra.mxu1 %v185_v42  ;;  %v80_v14 = vand.u32 65535, %v76_v13  ;;  %v81_v15 = vshrl.u32 %v76_v13, 16 }
  0x20   :  { %385 = vmatpush.msra.mxu0 %v354_v54  ;;  %v104_v23 = vmul.u32 %v102_v16, %v78_v10  ;;  %v105_v24 = vmul.u32 %v103_v17, %v78_v10  ;;  %v106_v26 = vmul.u32 %v102_v16, %v79_v11  ;;  %v107_v30 = vmul.u32 %v103_v17, %v79_v11 }
  0x21   :  { %405 = vmatpush.msra.mxu1 %v184_v55  ;;  %v82_v20 = vmul.u32 %v80_v14, %v78_v10  ;;  %v83_v21 = vmul.u32 %v81_v15, %v78_v10  ;;  %v84_v22 = vmul.u32 %v80_v14, %v79_v11  ;;  %v85_v27 = vmul.u32 %v81_v15, %v79_v11  ;;  %v433_v14 = vld [vmem:[%s734_s5 + $0x78] sm:$0xff]  ;;  %v432_v15 = vld [vmem:[%s734_s5 + $0x70] sm:$0xff] }
  0x22   :  { %v108_v31 = vshll.u32 %v105_v24, 16  ;;  %v110_v32 = vshll.u32 %v106_v26, 16  ;;  %v109_v44 = vshrl.u32 %v105_v24, 16  ;;  %v111_v50 = vshrl.u32 %v106_v26, 16  ;;  %438 = vmatpush.msra.mxu2 %v433_v14  ;;  %v429_v24 = vld [vmem:[%s734_s5 + $0x58] sm:$0xff] }
  0x23   :  { %v86_v28 = vshll.u32 %v83_v21, 16  ;;  %v88_v29 = vshll.u32 %v84_v22, 16  ;;  %v87_v39 = vshrl.u32 %v83_v21, 16  ;;  %v89_v47 = vshrl.u32 %v84_v22, 16  ;;  %v430_v21 = vld [vmem:[%s734_s5 + $0x60] sm:$0xff] }
  0x24   :  { %vm112_vm6 = vc.u32 %v104_v23, %v108_v31  ;;  %v114_v38 = vadd.s32 %v108_v31, %v104_v23  ;;  %v68_v54 = vsel %vm62_vm4, %v65_v33, %v67_v46  ;;  %439 = vmatpush.msra.mxu2 %v432_v15  ;;  %v427_v31 = vld [vmem:[%s734_s5 + $0x48] sm:$0xff]  ;;  %vm172_vm4 = vweird.f32 %v579_v18 }
  0x25   :  { %vm90_vm5 = vc.u32 %v82_v20, %v86_v28  ;;  %v92_v34 = vadd.s32 %v86_v28, %v82_v20  ;;  %v113_v42 = vsel %vm112_vm6, 1, %v484_v36  ;;  %v122_v58 = vmul.u32 %v636_v62, %v68_v54 }
  0x26   :  { %v91_v37 = vsel %vm90_vm5, 1, %v484_v36  ;;  %v115_v45 = vadd.s32 %v113_v42, %v107_v30  ;;  %vm116_vm8 = vc.u32 %v114_v38, %v110_v32  ;;  %v118_v53 = vadd.s32 %v114_v38, %v110_v32  ;;  %440 = vmatpush.msra.mxu2 %v431_v19 }
  0x27   :  { %v93_v41 = vadd.s32 %v91_v37, %v85_v27  ;;  %vm94_vm7 = vc.u32 %v92_v34, %v88_v29  ;;  %v117_v49 = vsel %vm116_vm8, 1, %v484_v36  ;;  %v428_v27 = vld [vmem:[%s734_s5 + $0x50] sm:$0xff] }
  0x28   :  { %v95_v43 = vsel %vm94_vm7, 1, %v484_v36  ;;  %v119_v51 = vadd.s32 %v117_v49, %v115_v45  ;;  %441 = vmatpush.msra.mxu2 %v430_v21  ;;  %v425_v36 = vld [vmem:[%s734_s5 + $0x38] sm:$0xff]  ;;  %v422_v49 = vld [vmem:[%s734_s5 + $0x20] sm:$0xff] }
  0x29   :  { %v97_v48 = vadd.s32 %v95_v43, %v93_v41  ;;  %v424_v41 = vld [vmem:[%s734_s5 + $0x30] sm:$0xff] }
  0x2a   :  { %v120_v55 = vadd.s32 %v119_v51, %v109_v44  ;;  %442 = vmatpush.msra.mxu2 %v429_v24  ;;  %v423_v44 = vld [vmem:[%s734_s5 + $0x28] sm:$0xff] }
  0x2b   :  { %v98_v52 = vadd.s32 %v97_v48, %v87_v39 }
  0x2c   :  { %v121_v57 = vadd.s32 %v120_v55, %v111_v50  ;;  %443 = vmatpush.msra.mxu2 %v428_v27 }
  0x2d   :  { %v99_v56 = vadd.s32 %v98_v52, %v89_v47 }
  0x2e   :  { %v125_v59 = vadd.s32 1, %v121_v57  ;;  %444 = vmatpush.msra.mxu2 %v427_v31 }
  0x2f   :  { %vm124_vm9 = vc.u32 %v99_v56, %v118_v53  ;;  %v123_v40 = vadd.s32 %v118_v53, %v99_v56 }
  0x30   :  { %v126_v60 = vsel %vm124_vm9, %v125_v59, %v121_v57  ;;  %445 = vmatpush.msra.mxu2 %v426_v25 }
  0x31   :  { %v127_v61 = vadd.s32 %v126_v60, %v122_v58 }
  0x32   :  { %446 = vmatpush.msra.mxu2 %v425_v36 }
  0x33   :  { %v128_v63 = vadd.s32 536870912, %v127_v61 }
  0x34   :  { %447 = vmatpush.msra.mxu2 %v424_v41 }
  0x35   :  { %v129_v0 = vshrl.u32 %v128_v63, 30 }
  0x36   :  { %448 = vmatpush.msra.mxu2 %v423_v44 }
  0x37   :  { %v130_v1 = vshll.u32 %v129_v0, 30  ;;  %v153_v23 = vsub.s32 4, %v129_v0 }
  0x38   :  { %449 = vmatpush.msra.mxu2 %v422_v49 }
  0x39   :  { %v131_v2 = vsub.s32 %v127_v61, %v130_v1  ;;  %v154_v29 = vsel %vm31_vm12, %v153_v23, %v129_v0 }
  0x3a   :  { %v156_v33 = vsel %vm30_vm13, 0, %v154_v29 }
  0x3b   :  { %vm132_vm10 = vcmp.lt.s32.totalorder %v131_v2, 0  ;;  %v133_v3 = vsub.s32 0, %v131_v2  ;;  %v173_v39 = vadd.s32 3, %v156_v33  ;;  %v344_v47 = vand.u32 3, %v156_v33 }
  0x3d   :  { %v134_v4 = vsel %vm132_vm10, %v133_v3, %v131_v2  ;;  %v174_v48 = vand.u32 3, %v173_v39  ;;  %vm349_vm14 = vcmp.eq.s32.totalorder %v344_v47, 2  ;;  %vm345_vm0 = vcmp.lt.s32.totalorder %v344_v47, 2  ;;  %v420_v3 = vld [vmem:[%s734_s5 + $0x10] sm:$0xff] }
  0x3e   :  { %v135_v5 = vclz %v134_v4  ;;  %vm346_vm1 = vcmp.eq.s32.totalorder %v344_v47, 0  ;;  %v418_v4 = vld [vmem:[%s734_s5] sm:$0xff] }
  0x3f   :  { %vm179_vm15 = vcmp.eq.s32.totalorder %v174_v48, 2  ;;  %vm176_vm2 = vcmp.eq.s32.totalorder %v174_v48, 0  ;;  %vm175_vm3 = vcmp.lt.s32.totalorder %v174_v48, 2 }
  0x40   :  { %v464_v6 = vadd.s32 4294967294, %v135_v5  ;;  %v476_v5 = vld [vmem:[%s735_s4] ss:$0 sm:$0xff] }
  0x42   :  { %vm465_vm11 = vcmp.lt.s32.totalorder %v464_v6, 0 }
  0x43   :  { %v138_v7 = vsel %vm465_vm11, 0, %v464_v6 }
  0x44   :  { %v139_v8 = vsub.s32 32, %v138_v7  ;;  %v140_v9 = vshll.u32 %v131_v2, %v138_v7  ;;  %v143_v10 = vsub.s32 4294967266, %v138_v7  ;;  %v421_v2 = vld [vmem:[%s734_s5 + $0x18] sm:$0xff] }
  0x45   :  { %450 = vmatpush.msra.mxu2 %v421_v2 }
  0x46   :  { %v141_v62 = vshrl.u32 %v123_v40, %v139_v8  ;;  %v144_v11 = vadd.s32 127, %v143_v10 }
  0x47   :  { %451 = vmatpush.msra.mxu2 %v420_v3 }
  0x48   :  { %v142_v12 = vor.u32 %v141_v62, %v140_v9  ;;  %v145_v13 = vshll.u32 %v144_v11, 23  ;;  %v477_v62 = vld [vmem:[%s736_s6] ss:$0 sm:$0xff] }
  0x4a   :  { %v146_v16 = vor.u32 4788187, %v145_v13  ;;  %v149_v17 = vcvt.s32.f32 %v142_v12 }
  0x4c   :  { %v147_v20 = vand.u32 2147483647, %v146_v16 }
  0x4e   :  { %v150_v22 = vmul.f32 %v149_v17, %v147_v20 }
  0x50   :  { %v151_v26 = vxor.u32 2147483648, %v150_v22 }
  0x52   :  { %v152_v28 = vsel %vm31_vm12, %v151_v26, %v150_v22 }
  0x53   :  { %v155_v30 = vsel %vm30_vm13, %v579_v18, %v152_v28  ;;  %v419_v18 = vld [vmem:[%s734_s5 + $0x8] sm:$0xff] }
  0x54   :  { %v157_v32 = vmul.f32 %v155_v30, %v155_v30  ;;  %452 = vmatpush.msra.mxu2 %v419_v18 }
  0x56   :  { %v158_v34 = vmul.f32 -0.001358992, %v157_v32  ;;  %v165_v35 = vmul.f32 -0.00019511016, %v157_v32  ;;  %453 = vmatpush.msra.mxu2 %v418_v4 }
  0x58   :  { %v159_v37 = vadd.f32 0.041655596, %v158_v34  ;;  %v166_v38 = vadd.f32 0.008332121, %v165_v35 }
  0x5a   :  { %v160_v42 = vmul.f32 %v159_v37, %v157_v32  ;;  %v167_v43 = vmul.f32 %v166_v38, %v157_v32 }
  0x5c   :  { %v161_v45 = vadd.f32 -0.4999988, %v160_v42  ;;  %v168_v46 = vadd.f32 -0.16666654, %v167_v43 }
  0x5e   :  { %v162_v50 = vmul.f32 %v161_v45, %v157_v32  ;;  %v169_v51 = vmul.f32 %v168_v46, %v157_v32 }
  0x60   :  { %v163_v52 = vadd.f32 1.0, %v162_v50  ;;  %v170_v53 = vadd.f32 1.0, %v169_v51 }
  0x62   :  { %v171_v54 = vmul.f32 %v170_v53, %v155_v30  ;;  %v180_v55 = vxor.u32 2147483648, %v163_v52 }
  0x64   :  { %v177_v56 = vxor.u32 2147483648, %v171_v54  ;;  %v351_v57 = vsel %vm349_vm14, %v180_v55, %v171_v54  ;;  %v181_v58 = vsel %vm179_vm15, %v180_v55, %v171_v54 }
  0x66   :  { %v348_v59 = vsel %vm346_vm1, %v163_v52, %v177_v56  ;;  %v178_v60 = vsel %vm176_vm2, %v163_v52, %v177_v56 }
  0x67   :  { %v352_v61 = vsel %vm345_vm0, %v348_v59, %v351_v57  ;;  %v182_v63 = vsel %vm175_vm3, %v178_v60, %v181_v58 }
  0x68   :  { %v353_v0 = vsel %vm172_vm4, nan, %v352_v61  ;;  %v183_v1 = vsel %vm172_vm4, nan, %v182_v63 }
  0x69   :  { %386 = vmatmul.f32.vlgmr.msra.gmra.mxu0 %v353_v0  ;;  %406 = vmatmul.f32.vlgmr.msra.gmra.mxu1 %v183_v1 }
  0xe6   :  { %v387_v6 = vpop.f32.mrf.mxu0  ;;  %v407_v40 = vpop.f32.mrf.mxu1 }
  0xe7   :  { %v408_v7 = vadd.f32 %v407_v40, %v387_v6 }
  0xe9   :  { %v414_v8 = vadd.f32 %v476_v5, %v408_v7 }
  0xeb   :  { %vm415_vm5 = vcmp.gt.f32.partialorder %v414_v8, 0.0  ;;  %v416_v9 = vmul.f32 0.01, %v414_v8 }
  0xed   :  { %v417_v10 = vsel %vm415_vm5, %v414_v8, %v416_v9 }
  0xee   :  { %454 = vmatmul.f32.vlgmr.msra.gmra.mxu2 %v417_v10 }
 0x171   :  { %v455_v11 = vpop.f32.mrf.mxu2 }
 0x172   :  { %v456_v12 = vadd.f32 %v477_v62, %v455_v11 }
 0x174   :  { %458 = vst [vmem:[%s737_s7] sm:$0xff] %v456_v12 }

</bundles_post_ra>
